<compile_context>
chip_gen: v7x
topology: tpu7x:2x2x1
jax: 0.10.0
libtpu: 0.0.40
codegen_flags: <defaults>
</compile_context>

<pallas_src>
import functools

import jax
import jax.numpy as jnp
from jax.experimental import pallas as pl
from jax.experimental.pallas import tpu as pltpu

LANE = 128


def _round_up(x, m):
    return (x + m - 1) // m * m


def mask_and_concat_kernel(con_ref, h_ref, w_ref, b_ref, r1_ref, r2_ref,
                           out_ref, *, thresh_c, thresh_h, n_batch):
    cp = con_ref.shape[1]      # lane-padded c_con  (multiple of 128)
    tp = w_ref.shape[1]        # lane-padded tr_out (multiple of 128)

    con = con_ref[...]                                                  # (B, cp)

    # Linear layer: h_in @ W^T + b  (MXU matmul, f32 accumulation)
    h_tr = jnp.dot(h_ref[...], w_ref[...],
                   preferred_element_type=jnp.float32) + b_ref[...]     # (B, tp)

    # Per-feature standardization over the batch dim (torch.std -> unbiased, N-1).
    # Padded (all-zero) feature lanes produce NaN here; the wrapper strips them.
    mean = jnp.mean(h_tr, axis=0, keepdims=True)
    centered = h_tr - mean
    var = jnp.sum(centered * centered, axis=0, keepdims=True) \
        * jnp.float32(1.0 / (n_batch - 1))
    h_norm = centered * jax.lax.rsqrt(var)        # rsqrt -> EUP (own VLIW slot)

    # Bernoulli masks: integer-domain compare against precomputed 23-bit draws.
    m1 = (r1_ref[...] >= thresh_c).astype(jnp.float32)                  # (B, cp)
    m2 = (r2_ref[...] >= thresh_h).astype(jnp.float32)                  # (B, tp)

    con_m = con * m1
    h_m = h_norm * m2

    # Packed, lane-dense output slab: every offset/width is a multiple of 128
    # so each write below is an unmasked full-vreg store (no vst.msk, no XLU
    # relayout from an in-kernel concatenate).
    o = 0
    out_ref[:, o:o + cp] = con;     o += cp     # ori   (con part)
    out_ref[:, o:o + tp] = h_norm;  o += tp     # ori   (h part)
    out_ref[:, o:o + cp] = con_m;   o += cp     # masked (con part)
    out_ref[:, o:o + tp] = h_m;     o += tp     # masked (h part)
    out_ref[:, o:o + cp] = m1;      o += cp     # mask1
    out_ref[:, o:o + tp] = m2                   # mask2


def mask_and_concat(con_in, h_in, w_t, bias, key, *, mask_c, mask_h):
    """con_in: (B, c_con) f32, h_in: (B, tr_in) f32,
       w_t: (tr_in, tr_out) f32 (nn.Linear weight pre-transposed ONCE at init),
       bias: (tr_out,) f32.  Returns (ori, masked, mask1, mask2)."""
    B, c_con = con_in.shape
    tr_in, tr_out = w_t.shape
    assert h_in.shape == (B, tr_in)

    cp = _round_up(c_con, LANE)
    kp = _round_up(tr_in, LANE)
    tp = _round_up(tr_out, LANE)

    # Lane-pad features so every vector op / store in the kernel is full-vreg.
    # (B maps to sublanes; at the demo shape B=8 it is already sublane-aligned.)
    con_p = jnp.zeros((B, cp), jnp.float32).at[:, :c_con].set(con_in)
    h_p = jnp.zeros((B, kp), jnp.float32).at[:, :tr_in].set(h_in)
    w_p = jnp.zeros((kp, tp), jnp.float32).at[:tr_in, :tr_out].set(w_t)
    b_p = jnp.zeros((1, tp), jnp.float32).at[0, :tr_out].set(bias)

    # Bernoulli draws as 23-bit integers (generated in XLA; the in-kernel
    # TPU-stateful PRNG has no interpret/CPU lowering).  Decision is
    # P(keep) = 1 - mask_rate, same as torch.rand(...) >= mask_rate.
    k1, k2 = jax.random.split(key)
    r1 = jax.random.randint(k1, (B, cp), 0, 1 << 23, dtype=jnp.int32)
    r2 = jax.random.randint(k2, (B, tp), 0, 1 << 23, dtype=jnp.int32)
    thresh_c = int(round(mask_c * (1 << 23)))
    thresh_h = int(round(mask_h * (1 << 23)))

    out_w = 3 * cp + 3 * tp
    kernel = functools.partial(mask_and_concat_kernel,
                               thresh_c=thresh_c, thresh_h=thresh_h, n_batch=B)

    # TODO(synk): for large B, tile the batch with a grid ("parallel" axis for
    # v7x's 2 TCs) and compute mean/var in a two-pass / accumulator scheme so
    # statistics stay global across batch tiles and VMEM stays bounded.
    out = pl.pallas_call(
        kernel,
        out_shape=jax.ShapeDtypeStruct((B, out_w), jnp.float32),
        in_specs=[pl.BlockSpec(memory_space=pltpu.MemorySpace.VMEM)] * 6,
        out_specs=pl.BlockSpec(memory_space=pltpu.MemorySpace.VMEM),
    )(con_p, h_p, w_p, b_p, r1, r2)

    # Unpack the slab (static 128-aligned offsets) and strip lane padding.
    o_con = 0
    o_h = cp
    o_conm = cp + tp
    o_hm = 2 * cp + tp
    o_m1 = 2 * cp + 2 * tp
    o_m2 = 3 * cp + 2 * tp
    ori = jnp.concatenate([out[:, o_con:o_con + c_con],
                           out[:, o_h:o_h + tr_out]], axis=1)
    masked = jnp.concatenate([out[:, o_conm:o_conm + c_con],
                              out[:, o_hm:o_hm + tr_out]], axis=1)
    mask1 = out[:, o_m1:o_m1 + c_con]
    mask2 = out[:, o_m2:o_m2 + tr_out]
    return ori, masked, mask1, mask2


if __name__ == "__main__":
    # Small shapes consistent with the module's forward
    B, C_CON, TR_IN, TR_OUT = 8, 16, 32, 16
    MASK_C, MASK_H = 0.3, 0.3

    key = jax.random.PRNGKey(0)
    k_con, k_h, k_w, k_b, k_mask = jax.random.split(key, 5)

    con_in = jax.random.normal(k_con, (B, C_CON), dtype=jnp.float32)
    h_in = jax.random.normal(k_h, (B, TR_IN), dtype=jnp.float32)

    # Deterministic nn.Linear-style init: U(-1/sqrt(tr_in), 1/sqrt(tr_in))
    bound = 1.0 / (TR_IN ** 0.5)
    weight = jax.random.uniform(k_w, (TR_OUT, TR_IN), jnp.float32, -bound, bound)
    bias = jax.random.uniform(k_b, (TR_OUT,), jnp.float32, -bound, bound)

    # Pre-transpose the weight ONCE (parameter-init time), not per call.
    w_t = weight.T                                      # (TR_IN, TR_OUT)

    ori, masked, mask1, mask2 = jax.block_until_ready(
        mask_and_concat(con_in, h_in, w_t, bias, k_mask,
                        mask_c=MASK_C, mask_h=MASK_H)
    )

    # --- deterministic-part check against pure JAX reference ---
    h_tr = h_in @ weight.T + bias
    mean = jnp.mean(h_tr, axis=0)
    std = jnp.sqrt(jnp.sum((h_tr - mean) ** 2, axis=0) / (B - 1))   # unbiased
    h_norm = (h_tr - mean) / std
    ori_ref = jnp.concatenate([con_in, h_norm], axis=1)
    assert jnp.allclose(ori, ori_ref, atol=1e-4, rtol=1e-4), "ori mismatch"

    # --- self-consistency: masked == ori * cat(mask1, mask2) ---
    full_mask = jnp.concatenate([mask1, mask2], axis=1)
    assert jnp.allclose(masked, ori * full_mask, atol=1e-6), "masked mismatch"
    assert set(jnp.unique(full_mask).tolist()) <= {0.0, 1.0}, "mask not binary"
    assert ori.shape == (B, C_CON + TR_OUT) and masked.shape == (B, C_CON + TR_OUT)
    assert mask1.shape == (B, C_CON) and mask2.shape == (B, TR_OUT)

    print("KERNEL_OK")
</pallas_src>

<mosaic_0001>
module attributes {stable_mosaic.version = 11 : i64} {
  func.func @mask_and_concat_kernel(%arg0: memref<8x128xf32, #tpu.memory_space<vmem>>, %arg1: memref<8x128xf32, #tpu.memory_space<vmem>>, %arg2: memref<128x128xf32, #tpu.memory_space<vmem>>, %arg3: memref<1x128xf32, #tpu.memory_space<vmem>>, %arg4: memref<8x128xi32, #tpu.memory_space<vmem>>, %arg5: memref<8x128xi32, #tpu.memory_space<vmem>>, %arg6: memref<8x768xf32, #tpu.memory_space<vmem>>) attributes {dimension_semantics = [], scalar_prefetch = 0 : i64, scratch_operands = 0 : i64, tpu.core_type = #tpu.core_type<tc>} {
    %c0 = arith.constant 0 : index
    %c0_0 = arith.constant 0 : index
    %0 = vector.load %arg0[%c0, %c0_0] : memref<8x128xf32, #tpu.memory_space<vmem>>, vector<8x128xf32>
    %c0_1 = arith.constant 0 : index
    %c0_2 = arith.constant 0 : index
    %1 = vector.load %arg1[%c0_1, %c0_2] : memref<8x128xf32, #tpu.memory_space<vmem>>, vector<8x128xf32>
    %c0_3 = arith.constant 0 : index
    %c0_4 = arith.constant 0 : index
    %2 = vector.load %arg2[%c0_3, %c0_4] : memref<128x128xf32, #tpu.memory_space<vmem>>, vector<128x128xf32>
    %cst = arith.constant dense<0.000000e+00> : vector<8x128xf32>
    %3 = tpu.matmul %1, %2, %cst {dimension_numbers = #tpu.dot_dimension_numbers<[1], [0], [0], [1], [0, 0, 1, 1], [], []>} : vector<8x128xf32>, vector<128x128xf32>, vector<8x128xf32> -> vector<8x128xf32>
    %c0_5 = arith.constant 0 : index
    %c0_6 = arith.constant 0 : index
    %4 = vector.load %arg3[%c0_5, %c0_6] : memref<1x128xf32, #tpu.memory_space<vmem>>, vector<1x128xf32>
    %5 = vector.broadcast %4 : vector<1x128xf32> to vector<8x128xf32>
    %6 = arith.addf %3, %5 : vector<8x128xf32>
    %cst_7 = arith.constant dense<0.000000e+00> : vector<128xf32>
    %7 = vector.multi_reduction <add>, %6, %cst_7 [0] : vector<8x128xf32> to vector<128xf32>
    %8 = vector.shape_cast %7 : vector<128xf32> to vector<1x128xf32>
    %cst_8 = arith.constant 8.000000e+00 : f32
    %9 = vector.broadcast %cst_8 : f32 to vector<1x128xf32>
    %10 = arith.divf %8, %9 : vector<1x128xf32>
    %11 = vector.broadcast %10 : vector<1x128xf32> to vector<8x128xf32>
    %12 = arith.subf %6, %11 : vector<8x128xf32>
    %13 = arith.mulf %12, %12 : vector<8x128xf32>
    %cst_9 = arith.constant dense<0.000000e+00> : vector<128xf32>
    %14 = vector.multi_reduction <add>, %13, %cst_9 [0] : vector<8x128xf32> to vector<128xf32>
    %15 = vector.shape_cast %14 : vector<128xf32> to vector<1x128xf32>
    %cst_10 = arith.constant 0.142857149 : f32
    %16 = vector.broadcast %cst_10 : f32 to vector<1x128xf32>
    %17 = arith.mulf %15, %16 : vector<1x128xf32>
    %18 = math.rsqrt %17 : vector<1x128xf32>
    %19 = vector.broadcast %18 : vector<1x128xf32> to vector<8x128xf32>
    %20 = arith.mulf %12, %19 : vector<8x128xf32>
    %c0_11 = arith.constant 0 : index
    %c0_12 = arith.constant 0 : index
    %21 = vector.load %arg4[%c0_11, %c0_12] : memref<8x128xi32, #tpu.memory_space<vmem>>, vector<8x128xi32>
    %c2516582_i32 = arith.constant 2516582 : i32
    %22 = vector.broadcast %c2516582_i32 : i32 to vector<8x128xi32>
    %23 = arith.cmpi sge, %21, %22 : vector<8x128xi32>
    %24 = arith.extui %23 : vector<8x128xi1> to vector<8x128xi32>
    %25 = arith.sitofp %24 : vector<8x128xi32> to vector<8x128xf32>
    %c0_13 = arith.constant 0 : index
    %c0_14 = arith.constant 0 : index
    %26 = vector.load %arg5[%c0_13, %c0_14] : memref<8x128xi32, #tpu.memory_space<vmem>>, vector<8x128xi32>
    %c2516582_i32_15 = arith.constant 2516582 : i32
    %27 = vector.broadcast %c2516582_i32_15 : i32 to vector<8x128xi32>
    %28 = arith.cmpi sge, %26, %27 : vector<8x128xi32>
    %29 = arith.extui %28 : vector<8x128xi1> to vector<8x128xi32>
    %30 = arith.sitofp %29 : vector<8x128xi32> to vector<8x128xf32>
    %31 = arith.mulf %0, %25 : vector<8x128xf32>
    %32 = arith.mulf %20, %30 : vector<8x128xf32>
    %c0_16 = arith.constant 0 : index
    %c0_17 = arith.constant 0 : index
    %33 = vector.load %arg6[%c0_16, %c0_17] : memref<8x768xf32, #tpu.memory_space<vmem>>, vector<8x128xf32>
    tpu.vector_store %arg6[%c0_16, %c0_17], %0 {strides = array<i32>} : memref<8x768xf32, #tpu.memory_space<vmem>>, vector<8x128xf32>,
    %c0_18 = arith.constant 0 : index
    %c128 = arith.constant 128 : index
    %34 = vector.load %arg6[%c0_18, %c128] : memref<8x768xf32, #tpu.memory_space<vmem>>, vector<8x128xf32>
    tpu.vector_store %arg6[%c0_18, %c128], %20 {strides = array<i32>} : memref<8x768xf32, #tpu.memory_space<vmem>>, vector<8x128xf32>,
    %c0_19 = arith.constant 0 : index
    %c256 = arith.constant 256 : index
    %35 = vector.load %arg6[%c0_19, %c256] : memref<8x768xf32, #tpu.memory_space<vmem>>, vector<8x128xf32>
    tpu.vector_store %arg6[%c0_19, %c256], %31 {strides = array<i32>} : memref<8x768xf32, #tpu.memory_space<vmem>>, vector<8x128xf32>,
    %c0_20 = arith.constant 0 : index
    %c384 = arith.constant 384 : index
    %36 = vector.load %arg6[%c0_20, %c384] : memref<8x768xf32, #tpu.memory_space<vmem>>, vector<8x128xf32>
    tpu.vector_store %arg6[%c0_20, %c384], %32 {strides = array<i32>} : memref<8x768xf32, #tpu.memory_space<vmem>>, vector<8x128xf32>,
    %c0_21 = arith.constant 0 : index
    %c512 = arith.constant 512 : index
    %37 = vector.load %arg6[%c0_21, %c512] : memref<8x768xf32, #tpu.memory_space<vmem>>, vector<8x128xf32>
    tpu.vector_store %arg6[%c0_21, %c512], %25 {strides = array<i32>} : memref<8x768xf32, #tpu.memory_space<vmem>>, vector<8x128xf32>,
    %c0_22 = arith.constant 0 : index
    %c640 = arith.constant 640 : index
    %38 = vector.load %arg6[%c0_22, %c640] : memref<8x768xf32, #tpu.memory_space<vmem>>, vector<8x128xf32>
    tpu.vector_store %arg6[%c0_22, %c640], %30 {strides = array<i32>} : memref<8x768xf32, #tpu.memory_space<vmem>>, vector<8x128xf32>,
    return
  }
}

</mosaic_0001>

<bundles_post_ra>
// kernel: tpu_custom_call.1
= control target key start
LH: loop header
LB: loop body
LE: loop exit
PB: predicated region body
PF: predicated region fallthrough
CT: control target
= control target key end

     0   :  { %11 = vsyncpa [#allocation3], 0  ;;  %s492_s0 = inlined_call_operand.hbm [shape: f32[8,128], index: 0, kind: input, shape index: {}]   ;;  %s493_s1 = inlined_call_operand.hbm [shape: f32[8,128], index: 1, kind: input, shape index: {}]   ;;  %s494_s2 = inlined_call_operand.hbm [shape: f32[128,128], index: 2, kind: input, shape index: {}]   ;;  %s495_s3 = inlined_call_operand.vmem [shape: f32[1,128], index: 3, kind: input, shape index: {}]   ;;  %s496_s4 = inlined_call_operand.vmem [shape: s32[8,128], index: 4, kind: input, shape index: {}]   ;;  %s497_s5 = inlined_call_operand.vmem [shape: s32[8,128], index: 5, kind: input, shape index: {}]   ;;  %s498_s6 = inlined_call_operand.hbm [shape: f32[8,768], index: 6, kind: output, shape index: {}]  }
   0x1   :  { %12 = vsyncpa [#allocation6], 0 }
   0x2   :  { %13 = vsyncpa [#allocation4], 0  ;;  %s391_s21 = smov [#allocation5]   ;;  %s392_s23 = smov [#allocation2]  }
   0x3   :  { %s30_s22 = sshll.u32 %s391_s21, 4  ;;  %s20_s24 = sshll.u32 %s392_s23, 4  ;;  %s31_s22 = int_to_ptr.vmem [resolvable:$true] %s30_s22  ;;  %s21_s24 = int_to_ptr.vmem [resolvable:$true] %s20_s24 }
   0x4   :  { %s297_s27 = scalar_lea.hbm %s493_s1, 128 }
   0x5   :  { %p298_p0 = scmp.ne.s32.totalorder %s493_s1, %s297_s27  ;;  %p301_p1 = scmp.lt.u32.totalorder %s297_s27, %s493_s1 }
   0x7   :  { %p303_p2 = pnand %p301_p1, %p298_p0 }
   0x9   :  { %306 = shalt.err (!%p303_p2)
}
   0xa   :  { %s307_s8 = scalar_lea.vmem %s31_s22, 128  ;;  %p312_p4 = scmp.lt.s32.totalorder %s31_s22, %s31_s22 }
   0xb   :  { %p308_p3 = scmp.ne.s32.totalorder %s31_s22, %s307_s8  ;;  %p313_p5 = scmp.lt.s32.totalorder %s307_s8, %s307_s8 }
   0xd   :  { %p314_p6 = por %p313_p5, %p312_p4 }
   0xf   :  { %p315_p7 = pnand %p314_p6, %p308_p3 }
  0x11   :  { %318 = shalt.err (!%p315_p7)
}
  0x12   :  { %33 = dma.hbm_to_vmem [thread:$0]  %s493_s1, 128, %s31_s22, [#allocation6]  }
  0x13   :  { %s319_s13 = scalar_lea.hbm %s492_s0, 128 }
  0x14   :  { %p320_p8 = scmp.ne.s32.totalorder %s492_s0, %s319_s13  ;;  %p323_p9 = scmp.lt.u32.totalorder %s319_s13, %s492_s0 }
  0x16   :  { %p325_p10 = pnand %p323_p9, %p320_p8 }
  0x18   :  { %328 = shalt.err (!%p325_p10)
}
  0x19   :  { %s329_s18 = scalar_lea.vmem %s21_s24, 128  ;;  %p334_p12 = scmp.lt.s32.totalorder %s21_s24, %s21_s24 }
  0x1a   :  { %p330_p11 = scmp.ne.s32.totalorder %s21_s24, %s329_s18  ;;  %p335_p13 = scmp.lt.s32.totalorder %s329_s18, %s329_s18 }
  0x1c   :  { %p336_p0 = por %p335_p13, %p334_p12 }
  0x1e   :  { %p337_p1 = pnand %p336_p0, %p330_p11 }
  0x20   :  { %340 = shalt.err (!%p337_p1)
}
  0x21   :  { %23 = dma.hbm_to_vmem [thread:$0]  %s492_s0, 128, %s21_s24, [#allocation3]  }
  0x22   :  { %s393_s20 = smov [#allocation7]   ;;  %s341_s25 = scalar_lea.hbm %s494_s2, 2048 }
  0x23   :  { %s39_s21 = sshll.u32 %s393_s20, 4  ;;  %p342_p2 = scmp.ne.s32.totalorder %s494_s2, %s341_s25  ;;  %s40_s21 = int_to_ptr.vmem [resolvable:$true] %s39_s21 }
  0x24   :  { %p345_p3 = scmp.lt.u32.totalorder %s341_s25, %s494_s2 }
  0x26   :  { %p347_p4 = pnand %p345_p3, %p342_p2 }
  0x28   :  { %350 = shalt.err (!%p347_p4)
}
  0x29   :  { %s351_s30 = scalar_lea.vmem %s40_s21, 2048  ;;  %p356_p6 = scmp.lt.s32.totalorder %s40_s21, %s40_s21 }
  0x2a   :  { %p352_p5 = scmp.ne.s32.totalorder %s40_s21, %s351_s30  ;;  %p357_p7 = scmp.lt.s32.totalorder %s351_s30, %s351_s30 }
  0x2c   :  { %p358_p8 = por %p357_p7, %p356_p6 }
  0x2e   :  { %p359_p9 = pnand %p358_p8, %p352_p5 }
  0x30   :  { %362 = shalt.err (!%p359_p9)
}
  0x31   :  { %s394_s0 = smov 128   ;;  %s395_s24 = smov 8  }
  0x32   :  { %45 = dma.hbm_to_vmem [thread:$0]  %s494_s2, 2048, %s40_s21, [#allocation6], %s394_s0, %s394_s0, %s395_s24  }
  0x33   :  { %385 = dma.done.wait [#allocation3], 128  }
  0x34   :  { %386 = vsyncadd [#allocation3], 4294967168 }
  0x35   :  { %387 = dma.done.wait [#allocation6], 2176  }
  0x36   :  { %388 = vsyncadd [#allocation6], 4294965120  ;;  %v396_v0 = vmov 0.0|0.0   ;;  %vm397_vm0 = vmmov 0   ;;  %v398_v1 = vmov 0.0   ;;  %v63_v2 = vld [vmem:[#allocation7] sm:$0xff] }
  0x37   :  { %262 = vmatprep.subr.bf16.mxu0 %v396_v0  ;;  %259 = vmatprep.mubr.msk.f32.mxu0 %vm397_vm0, %v398_v1  ;;  %v64_v3 = vld [vmem:[#allocation7 + $0x8] sm:$0xff]  ;;  %v65_v4 = vld [vmem:[#allocation7 + $0x10] sm:$0xff]  ;;  %v66_v6 = vld [vmem:[#allocation7 + $0x18] sm:$0xff] }
  0x38   :  { %v263_v5 = vpack.c.bf16 %v64_v3, %v63_v2  ;;  %v266_v7 = vpack.c.bf16 %v66_v6, %v65_v4  ;;  %v67_v8 = vld [vmem:[#allocation7 + $0x20] sm:$0xff]  ;;  %v68_v9 = vld [vmem:[#allocation7 + $0x28] sm:$0xff]  ;;  %v61_v10 = vld [vmem:[#allocation2] sm:$0xff] }
  0x39   :  { %v175_v11 = vld [vmem:[%s496_s4] sm:$0xff]  ;;  %185 = vst [vmem:[#allocation8] sm:$0xff] %v61_v10  ;;  %v269_v13 = vpack.c.bf16 %v68_v9, %v67_v8  ;;  %v70_v16 = vld [vmem:[#allocation7 + $0x38] sm:$0xff]  ;;  %v71_v20 = vld [vmem:[#allocation7 + $0x40] sm:$0xff] }
  0x3a   :  { %264 = vmatpush3.bf16.msra.mxu0 %v263_v5  ;;  %vm176_vm1 = vcmp.ge.s32.totalorder %v175_v11, 2516582  ;;  %v179_v12 = vld [vmem:[%s497_s5] sm:$0xff]  ;;  %v72_v21 = vld [vmem:[#allocation7 + $0x48] sm:$0xff]  ;;  %v74_v24 = vld [vmem:[#allocation7 + $0x58] sm:$0xff] }
  0x3b   :  { %265 = vmatprep.subr.bf16.mxu0 %v396_v0  ;;  %v208_v14 = vsel %vm176_vm1, 1.0, %v398_v1  ;;  %vm180_vm2 = vcmp.ge.s32.totalorder %v179_v12, 2516582  ;;  %v69_v15 = vld [vmem:[#allocation7 + $0x30] sm:$0xff]  ;;  %v275_v22 = vpack.c.bf16 %v72_v21, %v71_v20  ;;  %v75_v26 = vld [vmem:[#allocation7 + $0x60] sm:$0xff]  ;;  %v76_v27 = vld [vmem:[#allocation7 + $0x68] sm:$0xff] }
  0x3c   :  { %v209_v17 = vsel %vm180_vm2, 1.0, %v398_v1  ;;  %v183_v18 = vmul.f32 %v208_v14, %v61_v10  ;;  %189 = vst [vmem:[#allocation8 + $0x20] sm:$0xff] %v208_v14  ;;  %v272_v19 = vpack.c.bf16 %v70_v16, %v69_v15  ;;  %v73_v23 = vld [vmem:[#allocation7 + $0x50] sm:$0xff]  ;;  %v281_v28 = vpack.c.bf16 %v76_v27, %v75_v26  ;;  %v78_v30 = vld [vmem:[#allocation7 + $0x78] sm:$0xff] }
  0x3d   :  { %190 = vst [vmem:[#allocation8 + $0x28] sm:$0xff] %v209_v17  ;;  %v278_v25 = vpack.c.bf16 %v74_v24, %v73_v23  ;;  %v77_v29 = vld [vmem:[#allocation7 + $0x70] sm:$0xff]  ;;  %v62_v32 = vld [vmem:[#allocation5] sm:$0xff] }
  0x3e   :  { %267 = vmatpush3.bf16.msra.mxu0 %v266_v7  ;;  %187 = vst [vmem:[#allocation8 + $0x10] sm:$0xff] %v183_v18  ;;  %v284_v31 = vpack.c.bf16 %v78_v30, %v77_v29  ;;  %v207_v33 = vld [vmem:[%s495_s3] ss:$0 sm:$0xff]  ;;  %s399_s3 = smov [#allocation8]  }
  0x3f   :  { %268 = vmatprep.subr.bf16.mxu0 %v396_v0  ;;  %s197_s12 = sshll.u32 %s399_s3, 4  ;;  %s198_s12 = int_to_ptr.vmem [resolvable:$true] %s197_s12 }
  0x40   :  { %s363_s13 = scalar_lea.vmem %s198_s12, 768  ;;  %p368_p11 = scmp.lt.s32.totalorder %s198_s12, %s198_s12 }
  0x41   :  { %p364_p10 = scmp.ne.s32.totalorder %s198_s12, %s363_s13  ;;  %p369_p12 = scmp.lt.s32.totalorder %s363_s13, %s363_s13 }
  0x42   :  { %270 = vmatpush3.bf16.msra.mxu0 %v269_v13 }
  0x43   :  { %271 = vmatprep.subr.bf16.mxu0 %v396_v0  ;;  %p370_p13 = por %p369_p12, %p368_p11 }
  0x45   :  { %p371_p0 = pnand %p370_p13, %p364_p10 }
  0x46   :  { %273 = vmatpush3.bf16.msra.mxu0 %v272_v19 }
  0x47   :  { %274 = vmatprep.subr.bf16.mxu0 %v396_v0 }
  0x4a   :  { %276 = vmatpush3.bf16.msra.mxu0 %v275_v22 }
  0x4b   :  { %277 = vmatprep.subr.bf16.mxu0 %v396_v0 }
  0x4e   :  { %279 = vmatpush3.bf16.msra.mxu0 %v278_v25 }
  0x4f   :  { %280 = vmatprep.subr.bf16.mxu0 %v396_v0 }
  0x52   :  { %282 = vmatpush3.bf16.msra.mxu0 %v281_v28 }
  0x53   :  { %283 = vmatprep.subr.bf16.mxu0 %v396_v0 }
  0x56   :  { %285 = vmatpush3.bf16.msra.mxu0 %v284_v31 }
  0x59   :  { %260 = vmatmul.mubr.f32.vlgmr.msra.gmra.mrb[0].mxu0 %v62_v32 }
 0x12c   :  { %v152_v34 = vpop.f32.mrb[0].mxu0 }
 0x12d   :  { %v153_v35 = vadd.f32 %v207_v33, %v152_v34  ;;  %v261_v36 = vpop.f32.mrb[1].mxu0 }
 0x12f   :  { %v156_v37 = vrot.slane %v153_v35, 4 }
 0x131   :  { %v157_v38 = vadd.f32 %v156_v37, %v153_v35 }
 0x133   :  { %v158_v39 = vrot.slane %v157_v38, 2 }
 0x135   :  { %v159_v40 = vadd.f32 %v158_v39, %v157_v38 }
 0x137   :  { %v160_v41 = vrot.slane %v159_v40, 1 }
 0x139   :  { %v161_v42 = vadd.f32 %v160_v41, %v159_v40 }
 0x13b   :  { %v163_v43 = vmul.f32 0.125, %v161_v42 }
 0x13d   :  { %v164_v44 = vsub.f32 %v153_v35, %v163_v43 }
 0x13f   :  { %v165_v45 = vmul.f32 %v164_v44, %v164_v44 }
 0x141   :  { %v166_v46 = vrot.slane %v165_v45, 4 }
 0x143   :  { %v167_v47 = vadd.f32 %v166_v46, %v165_v45 }
 0x145   :  { %v168_v48 = vrot.slane %v167_v47, 2 }
 0x147   :  { %v169_v49 = vadd.f32 %v168_v48, %v167_v47 }
 0x149   :  { %v170_v50 = vrot.slane %v169_v49, 1 }
 0x14b   :  { %v171_v51 = vadd.f32 %v170_v50, %v169_v49 }
 0x14d   :  { %v172_v52 = vmul.f32 0.14285715, %v171_v51 }
 0x14f   :  { %295 = vrsqrt.f32 %v172_v52 }
 0x159   :  { %v296_v53 = vpop.eup %295 }
 0x15a   :  { %v174_v54 = vmul.f32 %v296_v53, %v164_v44 }
 0x15c   :  { %v184_v55 = vmul.f32 %v209_v17, %v174_v54  ;;  %186 = vst [vmem:[#allocation8 + $0x8] sm:$0xff] %v174_v54 }
 0x15e   :  { %188 = vst [vmem:[#allocation8 + $0x18] sm:$0xff] %v184_v55 }
 0x15f   :  { %374 = shalt.err (!%p371_p0)
}
 0x160   :  { %s375_s16 = scalar_lea.hbm %s498_s6, 768 }
 0x161   :  { %p376_p1 = scmp.ne.s32.totalorder %s498_s6, %s375_s16  ;;  %p379_p2 = scmp.lt.u32.totalorder %s375_s16, %s498_s6 }
 0x163   :  { %p381_p3 = pnand %p379_p2, %p376_p1 }
 0x165   :  { %384 = shalt.err (!%p381_p3)
}
 0x166   :  { %200 = dma.vmem_to_hbm [thread:$0]  %s198_s12, 768, %s498_s6, [#allocation4]  }
 0x167   :  { %389 = dma.done.wait [#allocation4], 768  }
 0x168   :  { %390 = vsyncadd [#allocation4], 4294966528 }
 0x169   :  { %204 = vsyncpa [#allocation3], 1 }
 0x16a   :  { %205 = vsyncpa [#allocation6], 1 }
 0x16b   :  { %206 = vsyncpa [#allocation4], 1 }

</bundles_post_ra>
